<compile_context>
chip_gen: v7x
topology: tpu7x:2x2x1
jax: 0.10.0
libtpu: 0.0.40
codegen_flags: <defaults>
</compile_context>

<pallas_src>
import functools

import jax
import jax.numpy as jnp
from jax.experimental import pallas as pl
from jax.experimental.pallas import tpu as pltpu


def _round_up(x, m):
    return (x + m - 1) // m * m


def _cdiv(a, b):
    return (a + b - 1) // b


# --------------------------------------------------------------------------
# Generation-aware configuration
# --------------------------------------------------------------------------
def _tpu_config():
    kind = ""
    try:
        kind = jax.devices()[0].device_kind.lower()
    except Exception:
        pass
    if ("v5 lite" in kind) or ("v5e" in kind) or ("v5litepod" in kind):
        # v5e: AI knee ~240 flops/byte -> 512-cubed tiles are already enough.
        return dict(name="v5e", tm_max=512, tn_max=512, tk_max=512,
                    vmem_limit=64 << 20, two_core=False)
    if "v6" in kind:
        # v6e: 128 MiB VMEM, 918 TF/s bf16 -> big tiles.
        return dict(name="v6e", tm_max=1024, tn_max=2048, tk_max=1024,
                    vmem_limit=100 << 20, two_core=False)
    if "v7" in kind:
        # v7x: only 64 MiB VMEM (32 MiB scoped default) but 2 TCs/chip.
        return dict(name="v7x", tm_max=1024, tn_max=2048, tk_max=512,
                    vmem_limit=56 << 20, two_core=True)
    # Unknown generation (v4/v5p/...): moderate, safe defaults.
    return dict(name="default", tm_max=512, tn_max=1024, tk_max=512,
                vmem_limit=64 << 20, two_core=False)


def _select_nk_tiles(out_dim, in_dim, cfg):
    """Balanced, lane-dense (multiple-of-128) N/K tiles. Independent of M."""
    n0 = _round_up(out_dim, 128)
    tn = min(cfg["tn_max"], _round_up(_cdiv(n0, _cdiv(n0, cfg["tn_max"])), 128))
    n_pad = _round_up(out_dim, tn)

    k0 = _round_up(in_dim, 128)
    tk = min(cfg["tk_max"], _round_up(_cdiv(k0, _cdiv(k0, cfg["tk_max"])), 128))
    k_pad = _round_up(in_dim, tk)
    return tn, tk, n_pad, k_pad


def _select_m_tile(m, cfg):
    """Balanced M tile (multiple of 8) minimizing zero-row over-padding."""
    m8 = _round_up(m, 8)
    tm_max = cfg["tm_max"]
    if m8 <= tm_max:
        tm = m8
    else:
        tm = _round_up(_cdiv(m8, _cdiv(m8, tm_max)), 8)
    return tm, _round_up(m8, tm)


# --------------------------------------------------------------------------
# Kernels
# --------------------------------------------------------------------------
def _kernel_single_k(x_ref, w_ref, b_ref, o_ref):
    # Whole K fits in one tile: no accumulator scratch, no branches.
    acc = jnp.dot(x_ref[...], w_ref[...], preferred_element_type=jnp.float32)
    o_ref[...] = (acc + b_ref[...]).astype(o_ref.dtype)


def _kernel_f32_out(x_ref, w_ref, b_ref, o_ref):
    # f32 output: accumulate directly into the VMEM-resident output tile.
    k = pl.program_id(2)
    part = jnp.dot(x_ref[...], w_ref[...], preferred_element_type=jnp.float32)

    @pl.when(k == 0)
    def _():
        o_ref[...] = part + b_ref[...]

    @pl.when(k > 0)
    def _():
        o_ref[...] += part


def _kernel_acc(x_ref, w_ref, b_ref, o_ref, acc_ref):
    # Low-precision output: f32 scratch accumulator, overwrite at k==0
    # (saves the zero-init store), bias + cast only in the finalize branch.
    k = pl.program_id(2)
    part = jnp.dot(x_ref[...], w_ref[...], preferred_element_type=jnp.float32)

    @pl.when(k == 0)
    def _():
        acc_ref[...] = part

    @pl.when(k > 0)
    def _():
        acc_ref[...] += part

    @pl.when(k == pl.num_programs(2) - 1)
    def _():
        o_ref[...] = (acc_ref[...] + b_ref[...]).astype(o_ref.dtype)


# --------------------------------------------------------------------------
# Pallas launch wrapper (shapes/tiles static -> cached by jit)
# --------------------------------------------------------------------------
@functools.partial(
    jax.jit,
    static_argnames=("tm", "tn", "tk", "out_dtype", "vmem_limit_bytes"))
def _matmul_bias_pallas(x_p, w_p, b_p, *, tm, tn, tk, out_dtype,
                        vmem_limit_bytes):
    m_pad, k_pad = x_p.shape
    _, n_pad = w_p.shape
    grid_m, grid_n, grid_k = m_pad // tm, n_pad // tn, k_pad // tk

    x_sz = jnp.dtype(x_p.dtype).itemsize
    w_sz = jnp.dtype(w_p.dtype).itemsize
    o_sz = jnp.dtype(out_dtype).itemsize
    cost = pl.CostEstimate(
        flops=2 * m_pad * n_pad * k_pad,
        transcendentals=0,
        bytes_accessed=(grid_n * m_pad * k_pad * x_sz       # x re-read per N tile
                        + grid_m * k_pad * n_pad * w_sz     # W re-read per M tile
                        + m_pad * n_pad * o_sz))            # output writeback

    if grid_k == 1:
        kernel = _kernel_single_k
        scratch = []
    elif jnp.dtype(out_dtype) == jnp.dtype(jnp.float32):
        kernel = _kernel_f32_out
        scratch = []
    else:
        kernel = _kernel_acc
        scratch = [pltpu.VMEM((tm, tn), jnp.float32)]

    return pl.pallas_call(
        kernel,
        out_shape=jax.ShapeDtypeStruct((m_pad, n_pad), out_dtype),
        grid_spec=pltpu.PrefetchScalarGridSpec(
            num_scalar_prefetch=0,
            grid=(grid_m, grid_n, grid_k),
            in_specs=[
                pl.BlockSpec((tm, tk), lambda i, j, k: (i, k)),   # x
                pl.BlockSpec((tk, tn), lambda i, j, k: (k, j)),   # W^T
                pl.BlockSpec((1, tn), lambda i, j, k: (0, j)),    # bias (f32)
            ],
            out_specs=pl.BlockSpec((tm, tn), lambda i, j, k: (i, j)),
            scratch_shapes=scratch,
        ),
        compiler_params=pltpu.CompilerParams(
            dimension_semantics=("parallel", "parallel", "arbitrary"),
            vmem_limit_bytes=vmem_limit_bytes,
        ),
        cost_estimate=cost,
    )(x_p, w_p, b_p)


# --------------------------------------------------------------------------
# Module-level wrapper (mirrors the PyTorch AffineLinear forward)
# --------------------------------------------------------------------------
class AffineLinear:
    """y = x @ W^T + b (PyTorch nn.Linear forward), backed by a Pallas kernel.

    The weight transpose + padding to the kernel's [K_pad, N_pad] layout is
    done ONCE here (it is independent of the batch size), so every forward
    call avoids a full-weight HBM relayout.
    """

    def __init__(self, weight, bias, *, compute_dtype=None, config=None,
                 small_problem_elems=1 << 18):
        self.out_dim, self.in_dim = weight.shape
        self.cfg = config if config is not None else _tpu_config()
        self.compute_dtype = compute_dtype
        self.small_problem_elems = small_problem_elems

        # Originals kept for the tiny-problem XLA fallback path.
        self._weight = weight
        self._bias = bias

        tn, tk, n_pad, k_pad = _select_nk_tiles(self.out_dim, self.in_dim,
                                                self.cfg)
        self.tn, self.tk, self.n_pad, self.k_pad = tn, tk, n_pad, k_pad

        w_dtype = compute_dtype if compute_dtype is not None else weight.dtype
        w_t = weight.astype(w_dtype).T                      # [K, N]
        self.w_t_padded = jnp.pad(
            w_t, ((0, k_pad - self.in_dim), (0, n_pad - self.out_dim)))
        self.bias_padded = jnp.pad(
            bias.astype(jnp.float32).reshape(1, -1),
            ((0, 0), (0, n_pad - self.out_dim)))

    def __call__(self, x):
        orig_shape = x.shape
        out_dtype = jnp.dtype(x.dtype)
        x2d = x.reshape(-1, self.in_dim)
        m = x2d.shape[0]

        # Tiny problems: a 1x1x1-grid pallas_call is pure launch overhead.
        if m * self.out_dim * self.in_dim < self.small_problem_elems:
            y = (jnp.dot(x2d, self._weight.T) + self._bias).astype(out_dtype)
            return y.reshape(*orig_shape[:-1], self.out_dim)

        tm, m_pad = _select_m_tile(m, self.cfg)
        tn = self.tn
        # v7x: make sure both TensorCores get work when the parallel grid
        # would otherwise collapse to a single program.
        if (self.cfg["two_core"] and m_pad // tm == 1
                and self.n_pad // tn == 1 and self.n_pad % 256 == 0):
            tn //= 2

        x_p = x2d
        if self.compute_dtype is not None:
            x_p = x_p.astype(self.compute_dtype)
        if (m_pad, self.k_pad) != (m, self.in_dim):
            x_p = jnp.pad(x_p, ((0, m_pad - m), (0, self.k_pad - self.in_dim)))

        out = _matmul_bias_pallas(
            x_p, self.w_t_padded, self.bias_padded,
            tm=tm, tn=tn, tk=self.tk,
            out_dtype=out_dtype,
            vmem_limit_bytes=int(self.cfg["vmem_limit"]))

        out = out[:m, :self.out_dim]
        return out.reshape(*orig_shape[:-1], self.out_dim)


def affine_linear(x, weight, bias, **kwargs):
    """One-shot functional API. Prefer the AffineLinear class for repeated
    calls: it hoists the weight transpose/pad out of the per-call path."""
    return AffineLinear(weight, bias, **kwargs)(x)


# --------------------------------------------------------------------------
# Demo / correctness checks
# --------------------------------------------------------------------------
if __name__ == "__main__":
    key = jax.random.PRNGKey(0)
    kx, kw, kb, kx2, kw2, kb2 = jax.random.split(key, 6)

    # ---- 1) Main Pallas path (auto config), f32 ----
    batch, seq, in_dim, out_dim = 2, 64, 128, 256
    bound = 1.0 / (in_dim ** 0.5)
    weight = jax.random.uniform(kw, (out_dim, in_dim), jnp.float32, -bound, bound)
    bias = jax.random.uniform(kb, (out_dim,), jnp.float32, -bound, bound)
    x = jax.random.normal(kx, (batch, seq, in_dim), jnp.float32)

    layer = AffineLinear(weight, bias)
    y = jax.block_until_ready(layer(x))
    y_ref = x @ weight.T + bias
    assert y.shape == (batch, seq, out_dim)
    assert jnp.allclose(y, y_ref, atol=1e-5, rtol=1e-5)

    # ---- 2) Multi-tile grid (forced small tiles) to exercise the
    #         K-accumulate path, f32 output (no scratch) ----
    small_cfg = dict(name="test", tm_max=64, tn_max=128, tk_max=128,
                     vmem_limit=32 << 20, two_core=False)
    in_dim2, out_dim2 = 256, 256
    bound2 = 1.0 / (in_dim2 ** 0.5)
    weight2 = jax.random.uniform(kw2, (out_dim2, in_dim2), jnp.float32,
                                 -bound2, bound2)
    bias2 = jax.random.uniform(kb2, (out_dim2,), jnp.float32, -bound2, bound2)
    x2 = jax.random.normal(kx2, (batch, seq, in_dim2), jnp.float32)

    layer2 = AffineLinear(weight2, bias2, config=small_cfg)
    y2 = jax.block_until_ready(layer2(x2))
    y2_ref = x2 @ weight2.T + bias2
    assert jnp.allclose(y2, y2_ref, atol=1e-5, rtol=1e-5)

    # ---- 3) bf16 inputs (exercises the scratch-accumulator kernel) ----
    x2_bf = x2.astype(jnp.bfloat16)
    w2_bf = weight2.astype(jnp.bfloat16)
    layer3 = AffineLinear(w2_bf, bias2, config=small_cfg)
    y3 = jax.block_until_ready(layer3(x2_bf))
    y3_ref = x2_bf.astype(jnp.float32) @ w2_bf.astype(jnp.float32).T + bias2
    assert jnp.allclose(y3.astype(jnp.float32), y3_ref, atol=2e-2, rtol=2e-2)

    # ---- 4) Tiny-problem XLA fallback path ----
    x_tiny = jax.random.normal(kx, (2, 8, 32), jnp.float32)
    w_tiny = jax.random.uniform(kw, (32, 32), jnp.float32, -0.2, 0.2)
    b_tiny = jax.random.uniform(kb, (32,), jnp.float32, -0.2, 0.2)
    y_tiny = jax.block_until_ready(AffineLinear(w_tiny, b_tiny)(x_tiny))
    assert jnp.allclose(y_tiny, x_tiny @ w_tiny.T + b_tiny, atol=1e-5, rtol=1e-5)

    print("KERNEL_OK")
</pallas_src>

<mosaic_0001>
module attributes {stable_mosaic.version = 11 : i64} {
  func.func @_kernel_single_k(%arg0: i32, %arg1: i32, %arg2: i32, %arg3: memref<128x128xf32, #tpu.memory_space<vmem>>, %arg4: memref<128x256xf32, #tpu.memory_space<vmem>>, %arg5: memref<1x256xf32, #tpu.memory_space<vmem>>, %arg6: memref<128x256xf32, #tpu.memory_space<vmem>>) attributes {dimension_semantics = [#tpu.dimension_semantics<parallel>, #tpu.dimension_semantics<parallel>, #tpu.dimension_semantics<arbitrary>], iteration_bounds = array<i64: 1, 1, 1>, scalar_prefetch = 0 : i64, scratch_operands = 0 : i64, tpu.core_type = #tpu.core_type<tc>, window_params = [{transform_indices = @transform_0, window_bounds = array<i64: 128, 128>}, {transform_indices = @transform_1, window_bounds = array<i64: 128, 256>}, {transform_indices = @transform_2, window_bounds = array<i64: 1, 256>}, {transform_indices = @transform_3, window_bounds = array<i64: 128, 256>}]} {
    %c0 = arith.constant 0 : index
    %c0_0 = arith.constant 0 : index
    %0 = vector.load %arg3[%c0, %c0_0] : memref<128x128xf32, #tpu.memory_space<vmem>>, vector<128x128xf32>
    %c0_1 = arith.constant 0 : index
    %c0_2 = arith.constant 0 : index
    %1 = vector.load %arg4[%c0_1, %c0_2] : memref<128x256xf32, #tpu.memory_space<vmem>>, vector<128x256xf32>
    %cst = arith.constant dense<0.000000e+00> : vector<128x256xf32>
    %2 = tpu.matmul %0, %1, %cst {dimension_numbers = #tpu.dot_dimension_numbers<[1], [0], [0], [1], [0, 0, 1, 1], [], []>} : vector<128x128xf32>, vector<128x256xf32>, vector<128x256xf32> -> vector<128x256xf32>
    %c0_3 = arith.constant 0 : index
    %c0_4 = arith.constant 0 : index
    %3 = vector.load %arg5[%c0_3, %c0_4] : memref<1x256xf32, #tpu.memory_space<vmem>>, vector<1x256xf32>
    %4 = vector.broadcast %3 : vector<1x256xf32> to vector<128x256xf32>
    %5 = arith.addf %2, %4 : vector<128x256xf32>
    %c0_5 = arith.constant 0 : index
    %c0_6 = arith.constant 0 : index
    %6 = vector.load %arg6[%c0_5, %c0_6] : memref<128x256xf32, #tpu.memory_space<vmem>>, vector<128x256xf32>
    tpu.vector_store %arg6[%c0_5, %c0_6], %5 {strides = array<i32>} : memref<128x256xf32, #tpu.memory_space<vmem>>, vector<128x256xf32>,
    return
  }
  func.func @transform_0(%arg0: i32, %arg1: i32, %arg2: i32) -> (i32, i32) {
    %c0_i32 = arith.constant 0 : i32
    return %arg0, %arg2 : i32, i32
  }
  func.func @transform_1(%arg0: i32, %arg1: i32, %arg2: i32) -> (i32, i32) {
    %c0_i32 = arith.constant 0 : i32
    return %arg2, %arg1 : i32, i32
  }
  func.func @transform_2(%arg0: i32, %arg1: i32, %arg2: i32) -> (i32, i32) {
    %c0_i32 = arith.constant 0 : i32
    %c0_i32_0 = arith.constant 0 : i32
    return %c0_i32, %arg1 : i32, i32
  }
  func.func @transform_3(%arg0: i32, %arg1: i32, %arg2: i32) -> (i32, i32) {
    %c0_i32 = arith.constant 0 : i32
    return %arg0, %arg1 : i32, i32
  }
}

</mosaic_0001>

<bundles_post_ra>
// kernel: _matmul_bias_pallas.1
= control target key start
LH: loop header
LB: loop body
LE: loop exit
PB: predicated region body
PF: predicated region fallthrough
CT: control target
= control target key end

     0   :  { %8 = vsyncpa [#allocation3], 0  ;;  %s611_s0 = inlined_call_operand.hbm [shape: f32[128,128], index: 0, kind: input, shape index: {}]   ;;  %s612_s1 = inlined_call_operand.hbm [shape: f32[128,256], index: 1, kind: input, shape index: {}]   ;;  %s613_s2 = inlined_call_operand.hbm [shape: f32[1,256], index: 2, kind: input, shape index: {}]   ;;  %s614_s3 = inlined_call_operand.hbm [shape: f32[128,256], index: 3, kind: output, shape index: {}]  }
   0x1   :  { %9 = vsyncpa [#allocation6], 0 }
   0x2   :  { %10 = vsyncpa [#allocation4], 0  ;;  %s476_s12 = smov [#allocation5]   ;;  %s382_s16 = scalar_lea.hbm %s612_s1, 4096 }
   0x3   :  { %s28_s13 = sshll.u32 %s476_s12, 4  ;;  %p383_p0 = scmp.ne.s32.totalorder %s612_s1, %s382_s16  ;;  %s29_s13 = int_to_ptr.vmem [resolvable:$true] %s28_s13 }
   0x4   :  { %p386_p1 = scmp.lt.u32.totalorder %s382_s16, %s612_s1 }
   0x6   :  { %p388_p2 = pnand %p386_p1, %p383_p0 }
   0x8   :  { %391 = shalt.err (!%p388_p2)
}
   0x9   :  { %s392_s21 = scalar_lea.vmem %s29_s13, 4096  ;;  %p397_p4 = scmp.lt.s32.totalorder %s29_s13, %s29_s13 }
   0xa   :  { %p393_p3 = scmp.ne.s32.totalorder %s29_s13, %s392_s21  ;;  %p398_p5 = scmp.lt.s32.totalorder %s392_s21, %s392_s21 }
   0xc   :  { %p399_p6 = por %p398_p5, %p397_p4 }
   0xe   :  { %p400_p7 = pnand %p399_p6, %p393_p3 }
  0x10   :  { %403 = shalt.err (!%p400_p7)
}
  0x11   :  { %s477_s22 = smov 256   ;;  %s478_s23 = smov 16  }
  0x12   :  { %34 = dma.hbm_to_vmem [thread:$0]  %s612_s1, 4096, %s29_s13, [#allocation6], %s477_s22, %s477_s22, %s478_s23  }
  0x13   :  { %s479_s26 = smov [#allocation2]   ;;  %s404_s30 = scalar_lea.hbm %s611_s0, 2048 }
  0x14   :  { %s16_s27 = sshll.u32 %s479_s26, 4  ;;  %p405_p8 = scmp.ne.s32.totalorder %s611_s0, %s404_s30  ;;  %s17_s27 = int_to_ptr.vmem [resolvable:$true] %s16_s27 }
  0x15   :  { %p408_p9 = scmp.lt.u32.totalorder %s404_s30, %s611_s0 }
  0x17   :  { %p410_p10 = pnand %p408_p9, %p405_p8 }
  0x19   :  { %413 = shalt.err (!%p410_p10)
}
  0x1a   :  { %s414_s8 = scalar_lea.vmem %s17_s27, 2048  ;;  %p419_p12 = scmp.lt.s32.totalorder %s17_s27, %s17_s27 }
  0x1b   :  { %p415_p11 = scmp.ne.s32.totalorder %s17_s27, %s414_s8  ;;  %p420_p13 = scmp.lt.s32.totalorder %s414_s8, %s414_s8 }
  0x1d   :  { %p421_p0 = por %p420_p13, %p419_p12 }
  0x1f   :  { %p422_p1 = pnand %p421_p0, %p415_p11 }
  0x21   :  { %425 = shalt.err (!%p422_p1)
}
  0x22   :  { %s480_s1 = smov 128   ;;  %s481_s9 = smov 8  }
  0x23   :  { %22 = dma.hbm_to_vmem [thread:$0]  %s611_s0, 2048, %s17_s27, [#allocation3], %s480_s1, %s480_s1, %s481_s9  }
  0x24   :  { %s482_s12 = smov [#allocation7]   ;;  %s426_s16 = scalar_lea.hbm %s613_s2, 32 }
  0x25   :  { %s41_s13 = sshll.u32 %s482_s12, 4  ;;  %p427_p2 = scmp.ne.s32.totalorder %s613_s2, %s426_s16  ;;  %s42_s13 = int_to_ptr.vmem [resolvable:$true] %s41_s13 }
  0x26   :  { %p430_p3 = scmp.lt.u32.totalorder %s426_s16, %s613_s2 }
  0x28   :  { %p432_p4 = pnand %p430_p3, %p427_p2 }
  0x2a   :  { %435 = shalt.err (!%p432_p4)
}
  0x2b   :  { %s436_s21 = scalar_lea.vmem %s42_s13, 32  ;;  %p441_p6 = scmp.lt.s32.totalorder %s42_s13, %s42_s13 }
  0x2c   :  { %p437_p5 = scmp.ne.s32.totalorder %s42_s13, %s436_s21  ;;  %p442_p7 = scmp.lt.s32.totalorder %s436_s21, %s436_s21 }
  0x2e   :  { %p443_p8 = por %p442_p7, %p441_p6 }
  0x30   :  { %p444_p9 = pnand %p443_p8, %p437_p5 }
  0x32   :  { %447 = shalt.err (!%p444_p9)
}
  0x33   :  { %44 = dma.hbm_to_vmem [thread:$0]  %s613_s2, 32, %s42_s13, [#allocation6]  }
  0x34   :  { %470 = dma.done.wait [#allocation3], 2048  }
  0x35   :  { %471 = vsyncadd [#allocation3], 4294965248 }
  0x36   :  { %472 = dma.done.wait [#allocation6], 4128  }
  0x37   :  { %473 = vsyncadd [#allocation6], 4294963168  ;;  %v483_v0 = vmov 0.0   ;;  %v71_v1 = vld [vmem:[#allocation5 + $0x8] sm:$0xff]  ;;  %v73_v2 = vld [vmem:[#allocation5 + $0x18] sm:$0xff]  ;;  %s484_s2 = smov [#allocation8]  }
  0x38   :  { %178 = vmatprep.mubr.f32.mxu0 %v483_v0  ;;  %226 = vmatprep.mubr.f32.mxu1 %v483_v0  ;;  %v70_v3 = vld [vmem:[#allocation5] sm:$0xff]  ;;  %v325_v4 = vpack.c.bf16 %v73_v2, %v71_v1  ;;  %v72_v5 = vld [vmem:[#allocation5 + $0x10] sm:$0xff]  ;;  %v75_v6 = vld [vmem:[#allocation5 + $0x28] sm:$0xff]  ;;  %v104_v2 = vlaneseq  ;;  %s312_s25 = sshll.u32 %s484_s2, 4  ;;  %s313_s25 = int_to_ptr.vmem [resolvable:$true] %s312_s25 }
  0x39   :  { %v77_v7 = vld [vmem:[#allocation5 + $0x38] sm:$0xff]  ;;  %v327_v8 = vpack.c.bf16 %v72_v5, %v70_v3  ;;  %v74_v10 = vld [vmem:[#allocation5 + $0x20] sm:$0xff]  ;;  %v76_v11 = vld [vmem:[#allocation5 + $0x30] sm:$0xff]  ;;  %s448_s26 = scalar_lea.vmem %s313_s25, 4096  ;;  %p453_p11 = scmp.lt.s32.totalorder %s313_s25, %s313_s25 }
  0x3a   :  { %v329_v9 = vpack.c.bf16 %v77_v7, %v75_v6  ;;  %v79_v12 = vld [vmem:[#allocation5 + $0x48] sm:$0xff]  ;;  %326 = vmatprep.subr.bf16.mxu0 %v325_v4  ;;  %357 = vmatprep.subr.bf16.mxu1 %v325_v4  ;;  %v81_v13 = vld [vmem:[#allocation5 + $0x58] sm:$0xff]  ;;  %v331_v14 = vpack.c.bf16 %v76_v11, %v74_v10  ;;  %v78_v16 = vld [vmem:[#allocation5 + $0x40] sm:$0xff]  ;;  %v105_v3 = vshrl.u32 %v104_v2, 7  ;;  %p449_p10 = scmp.ne.s32.totalorder %s313_s25, %s448_s26  ;;  %p454_p12 = scmp.lt.s32.totalorder %s448_s26, %s448_s26 }
  0x3b   :  { %328 = vmatpush1.bf16.msra.mxu0 %v327_v8  ;;  %365 = vmatpush1.bf16.msra.mxu1 %v327_v8  ;;  %v333_v15 = vpack.c.bf16 %v81_v13, %v79_v12  ;;  %v80_v17 = vld [vmem:[#allocation5 + $0x50] sm:$0xff]  ;;  %v83_v18 = vld [vmem:[#allocation5 + $0x68] sm:$0xff]  ;;  %v85_v19 = vld [vmem:[#allocation5 + $0x78] sm:$0xff] }
  0x3c   :  { %330 = vmatprep.subr.bf16.mxu0 %v329_v9  ;;  %358 = vmatprep.subr.bf16.mxu1 %v329_v9  ;;  %v335_v20 = vpack.c.bf16 %v80_v17, %v78_v16  ;;  %v337_v21 = vpack.c.bf16 %v85_v19, %v83_v18  ;;  %v82_v22 = vld [vmem:[#allocation5 + $0x60] sm:$0xff]  ;;  %v84_v23 = vld [vmem:[#allocation5 + $0x70] sm:$0xff]  ;;  %v87_v24 = vld [vmem:[#allocation5 + $0x88] sm:$0xff]  ;;  %v106_v4 = vsub.s32 0, %v105_v3  ;;  %v110_v6 = vsub.s32 1, %v105_v3  ;;  %p455_p13 = por %p454_p12, %p453_p11 }
  0x3d   :  { %v89_v25 = vld [vmem:[#allocation5 + $0x98] sm:$0xff]  ;;  %v339_v26 = vpack.c.bf16 %v84_v23, %v82_v22  ;;  %v86_v28 = vld [vmem:[#allocation5 + $0x80] sm:$0xff]  ;;  %v88_v29 = vld [vmem:[#allocation5 + $0x90] sm:$0xff] }
  0x3e   :  { %v341_v27 = vpack.c.bf16 %v89_v25, %v87_v24  ;;  %v91_v30 = vld [vmem:[#allocation5 + $0xa8] sm:$0xff]  ;;  %v93_v31 = vld [vmem:[#allocation5 + $0xb8] sm:$0xff]  ;;  %v343_v32 = vpack.c.bf16 %v88_v29, %v86_v28  ;;  %v90_v34 = vld [vmem:[#allocation5 + $0xa0] sm:$0xff]  ;;  %p456_p0 = pnand %p455_p13, %p449_p10 }
  0x3f   :  { %332 = vmatpush1.bf16.msra.mxu0 %v331_v14  ;;  %366 = vmatpush1.bf16.msra.mxu1 %v331_v14  ;;  %v345_v33 = vpack.c.bf16 %v93_v31, %v91_v30  ;;  %v92_v35 = vld [vmem:[#allocation5 + $0xb0] sm:$0xff]  ;;  %v95_v36 = vld [vmem:[#allocation5 + $0xc8] sm:$0xff]  ;;  %v97_v37 = vld [vmem:[#allocation5 + $0xd8] sm:$0xff] }
  0x40   :  { %334 = vmatprep.subr.bf16.mxu0 %v333_v15  ;;  %359 = vmatprep.subr.bf16.mxu1 %v333_v15  ;;  %v347_v38 = vpack.c.bf16 %v92_v35, %v90_v34  ;;  %v349_v39 = vpack.c.bf16 %v97_v37, %v95_v36  ;;  %v94_v40 = vld [vmem:[#allocation5 + $0xc0] sm:$0xff]  ;;  %v96_v41 = vld [vmem:[#allocation5 + $0xd0] sm:$0xff]  ;;  %v99_v42 = vld [vmem:[#allocation5 + $0xe8] sm:$0xff] }
  0x41   :  { %v101_v43 = vld [vmem:[#allocation5 + $0xf8] sm:$0xff]  ;;  %v351_v44 = vpack.c.bf16 %v96_v41, %v94_v40  ;;  %v98_v46 = vld [vmem:[#allocation5 + $0xe0] sm:$0xff]  ;;  %v100_v47 = vld [vmem:[#allocation5 + $0xf0] sm:$0xff] }
  0x42   :  { %v353_v45 = vpack.c.bf16 %v101_v43, %v99_v42  ;;  %v355_v48 = vpack.c.bf16 %v100_v47, %v98_v46  ;;  %v54_v49 = vld [vmem:[#allocation2] sm:$0xff]  ;;  %v55_v51 = vld [vmem:[#allocation2 + $0x8] sm:$0xff]  ;;  %v56_v53 = vld [vmem:[#allocation2 + $0x10] sm:$0xff] }
  0x43   :  { %336 = vmatpush1.bf16.msra.mxu0 %v335_v20  ;;  %367 = vmatpush1.bf16.msra.mxu1 %v335_v20  ;;  %v62_v50 = vld [vmem:[#allocation2 + $0x40] sm:$0xff]  ;;  %v63_v52 = vld [vmem:[#allocation2 + $0x48] sm:$0xff]  ;;  %v64_v54 = vld [vmem:[#allocation2 + $0x50] sm:$0xff] }
  0x44   :  { %338 = vmatprep.subr.bf16.mxu0 %v337_v21  ;;  %360 = vmatprep.subr.bf16.mxu1 %v337_v21  ;;  %v57_v55 = vld [vmem:[#allocation2 + $0x18] sm:$0xff]  ;;  %v58_v57 = vld [vmem:[#allocation2 + $0x20] sm:$0xff]  ;;  %v59_v59 = vld [vmem:[#allocation2 + $0x28] sm:$0xff] }
  0x45   :  { %v65_v56 = vld [vmem:[#allocation2 + $0x58] sm:$0xff]  ;;  %v66_v58 = vld [vmem:[#allocation2 + $0x60] sm:$0xff]  ;;  %v67_v60 = vld [vmem:[#allocation2 + $0x68] sm:$0xff] }
  0x46   :  { %v60_v61 = vld [vmem:[#allocation2 + $0x30] sm:$0xff]  ;;  %v61_v63 = vld [vmem:[#allocation2 + $0x38] sm:$0xff]  ;;  %v102_v5 = vld [vmem:[#allocation7] sm:$0x3] }
  0x47   :  { %340 = vmatpush1.bf16.msra.mxu0 %v339_v26  ;;  %368 = vmatpush1.bf16.msra.mxu1 %v339_v26  ;;  %v68_v62 = vld [vmem:[#allocation2 + $0x70] sm:$0xff]  ;;  %v69_v1 = vld [vmem:[#allocation2 + $0x78] sm:$0xff]  ;;  %v560_v7 = vrot.slane %v102_v5, %v106_v4  ;;  %v562_v8 = vrot.slane %v102_v5, %v110_v6 }
  0x48   :  { %342 = vmatprep.subr.bf16.mxu0 %v341_v27  ;;  %361 = vmatprep.subr.bf16.mxu1 %v341_v27 }
  0x4b   :  { %344 = vmatpush1.bf16.msra.mxu0 %v343_v32  ;;  %369 = vmatpush1.bf16.msra.mxu1 %v343_v32 }
  0x4c   :  { %346 = vmatprep.subr.bf16.mxu0 %v345_v33  ;;  %362 = vmatprep.subr.bf16.mxu1 %v345_v33 }
  0x4f   :  { %348 = vmatpush1.bf16.msra.mxu0 %v347_v38  ;;  %370 = vmatpush1.bf16.msra.mxu1 %v347_v38 }
  0x50   :  { %350 = vmatprep.subr.bf16.mxu0 %v349_v39  ;;  %363 = vmatprep.subr.bf16.mxu1 %v349_v39 }
  0x53   :  { %352 = vmatpush1.bf16.msra.mxu0 %v351_v44  ;;  %371 = vmatpush1.bf16.msra.mxu1 %v351_v44 }
  0x54   :  { %354 = vmatprep.subr.bf16.mxu0 %v353_v45  ;;  %364 = vmatprep.subr.bf16.mxu1 %v353_v45 }
  0x57   :  { %356 = vmatpush1.bf16.msra.mxu0 %v355_v48  ;;  %372 = vmatpush1.bf16.msra.mxu1 %v355_v48 }
  0x5a   :  { %179 = vmatmul.mubr.f32.vlgmr.msra.gmra.mrb[0].mxu0 %v54_v49  ;;  %227 = vmatmul.mubr.f32.vlgmr.msra.gmra.mrb[0].mxu1 %v62_v50 }
  0x5b   :  { %184 = vmatprep.mubr.f32.mxu0 %v483_v0  ;;  %232 = vmatprep.mubr.f32.mxu1 %v483_v0 }
  0x5e   :  { %185 = vmatmul.mubr.f32.gmra.mrb[2].mxu0 %v55_v51  ;;  %233 = vmatmul.mubr.f32.gmra.mrb[2].mxu1 %v63_v52 }
  0x5f   :  { %190 = vmatprep.mubr.f32.mxu0 %v483_v0  ;;  %238 = vmatprep.mubr.f32.mxu1 %v483_v0 }
  0x62   :  { %191 = vmatmul.mubr.f32.gmra.mrb[4].mxu0 %v56_v53  ;;  %239 = vmatmul.mubr.f32.gmra.mrb[4].mxu1 %v64_v54 }
  0x63   :  { %196 = vmatprep.mubr.f32.mxu0 %v483_v0  ;;  %244 = vmatprep.mubr.f32.mxu1 %v483_v0 }
  0x66   :  { %197 = vmatmul.mubr.f32.gmra.mrb[6].mxu0 %v57_v55  ;;  %245 = vmatmul.mubr.f32.gmra.mrb[6].mxu1 %v65_v56 }
  0x67   :  { %202 = vmatprep.mubr.f32.mxu0 %v483_v0  ;;  %250 = vmatprep.mubr.f32.mxu1 %v483_v0 }
  0x6a   :  { %203 = vmatmul.mubr.f32.gmra.mrb[8].mxu0 %v58_v57  ;;  %251 = vmatmul.mubr.f32.gmra.mrb[8].mxu1 %v66_v58 }
  0x6b   :  { %208 = vmatprep.mubr.f32.mxu0 %v483_v0  ;;  %256 = vmatprep.mubr.f32.mxu1 %v483_v0 }
  0x6e   :  { %209 = vmatmul.mubr.f32.gmra.mrb[10].mxu0 %v59_v59  ;;  %257 = vmatmul.mubr.f32.gmra.mrb[10].mxu1 %v67_v60 }
  0x6f   :  { %214 = vmatprep.mubr.f32.mxu0 %v483_v0  ;;  %262 = vmatprep.mubr.f32.mxu1 %v483_v0 }
  0x72   :  { %215 = vmatmul.mubr.f32.gmra.mrb[12].mxu0 %v60_v61  ;;  %263 = vmatmul.mubr.f32.gmra.mrb[12].mxu1 %v68_v62 }
  0x73   :  { %220 = vmatprep.mubr.f32.mxu0 %v483_v0  ;;  %268 = vmatprep.mubr.f32.mxu1 %v483_v0 }
  0x76   :  { %221 = vmatmul.mubr.f32.gmra.mrb[14].mxu0 %v61_v63  ;;  %269 = vmatmul.mubr.f32.gmra.mrb[14].mxu1 %v69_v1 }
 0x12d   :  { %v180_v9 = vpop.f32.mrb[0].mxu0  ;;  %v228_v10 = vpop.f32.mrb[0].mxu1 }
 0x12e   :  { %v181_v11 = vadd.f32 %v180_v9, %v560_v7  ;;  %v229_v12 = vadd.f32 %v228_v10, %v560_v7  ;;  %v182_v0 = vpop.f32.mrb[1].mxu0  ;;  %v230_v13 = vpop.f32.mrb[1].mxu1 }
 0x12f   :  { %v183_v14 = vadd.f32 %v182_v0, %v562_v8  ;;  %v231_v15 = vadd.f32 %v230_v13, %v562_v8 }
 0x130   :  { %275 = vst [vmem:[#allocation8] sm:$0xff] %v181_v11  ;;  %291 = vst [vmem:[#allocation8 + $0x80] sm:$0xff] %v229_v12 }
 0x131   :  { %276 = vst [vmem:[#allocation8 + $0x8] sm:$0xff] %v183_v14  ;;  %292 = vst [vmem:[#allocation8 + $0x88] sm:$0xff] %v231_v15  ;;  %v186_v16 = vpop.f32.mrb[2].mxu0  ;;  %v234_v17 = vpop.f32.mrb[2].mxu1 }
 0x132   :  { %v187_v18 = vadd.f32 %v186_v16, %v560_v7  ;;  %v235_v19 = vadd.f32 %v234_v17, %v560_v7  ;;  %v188_v20 = vpop.f32.mrb[3].mxu0  ;;  %v236_v21 = vpop.f32.mrb[3].mxu1 }
 0x133   :  { %v189_v22 = vadd.f32 %v188_v20, %v562_v8  ;;  %v237_v23 = vadd.f32 %v236_v21, %v562_v8 }
 0x134   :  { %277 = vst [vmem:[#allocation8 + $0x10] sm:$0xff] %v187_v18  ;;  %293 = vst [vmem:[#allocation8 + $0x90] sm:$0xff] %v235_v19 }
 0x135   :  { %278 = vst [vmem:[#allocation8 + $0x18] sm:$0xff] %v189_v22  ;;  %294 = vst [vmem:[#allocation8 + $0x98] sm:$0xff] %v237_v23  ;;  %v192_v24 = vpop.f32.mrb[4].mxu0  ;;  %v240_v25 = vpop.f32.mrb[4].mxu1 }
 0x136   :  { %v193_v26 = vadd.f32 %v192_v24, %v560_v7  ;;  %v241_v27 = vadd.f32 %v240_v25, %v560_v7  ;;  %v194_v28 = vpop.f32.mrb[5].mxu0  ;;  %v242_v29 = vpop.f32.mrb[5].mxu1 }
 0x137   :  { %v195_v30 = vadd.f32 %v194_v28, %v562_v8  ;;  %v243_v31 = vadd.f32 %v242_v29, %v562_v8 }
 0x138   :  { %279 = vst [vmem:[#allocation8 + $0x20] sm:$0xff] %v193_v26  ;;  %295 = vst [vmem:[#allocation8 + $0xa0] sm:$0xff] %v241_v27 }
 0x139   :  { %280 = vst [vmem:[#allocation8 + $0x28] sm:$0xff] %v195_v30  ;;  %296 = vst [vmem:[#allocation8 + $0xa8] sm:$0xff] %v243_v31  ;;  %v198_v32 = vpop.f32.mrb[6].mxu0  ;;  %v246_v33 = vpop.f32.mrb[6].mxu1 }
 0x13a   :  { %v199_v34 = vadd.f32 %v198_v32, %v560_v7  ;;  %v247_v35 = vadd.f32 %v246_v33, %v560_v7  ;;  %v200_v36 = vpop.f32.mrb[7].mxu0  ;;  %v248_v37 = vpop.f32.mrb[7].mxu1 }
 0x13b   :  { %v201_v38 = vadd.f32 %v200_v36, %v562_v8  ;;  %v249_v39 = vadd.f32 %v248_v37, %v562_v8 }
 0x13c   :  { %281 = vst [vmem:[#allocation8 + $0x30] sm:$0xff] %v199_v34  ;;  %297 = vst [vmem:[#allocation8 + $0xb0] sm:$0xff] %v247_v35 }
 0x13d   :  { %282 = vst [vmem:[#allocation8 + $0x38] sm:$0xff] %v201_v38  ;;  %298 = vst [vmem:[#allocation8 + $0xb8] sm:$0xff] %v249_v39  ;;  %v204_v40 = vpop.f32.mrb[8].mxu0  ;;  %v252_v41 = vpop.f32.mrb[8].mxu1 }
 0x13e   :  { %v205_v42 = vadd.f32 %v204_v40, %v560_v7  ;;  %v253_v43 = vadd.f32 %v252_v41, %v560_v7  ;;  %v206_v44 = vpop.f32.mrb[9].mxu0  ;;  %v254_v45 = vpop.f32.mrb[9].mxu1 }
 0x13f   :  { %v207_v46 = vadd.f32 %v206_v44, %v562_v8  ;;  %v255_v47 = vadd.f32 %v254_v45, %v562_v8 }
 0x140   :  { %283 = vst [vmem:[#allocation8 + $0x40] sm:$0xff] %v205_v42  ;;  %299 = vst [vmem:[#allocation8 + $0xc0] sm:$0xff] %v253_v43 }
 0x141   :  { %284 = vst [vmem:[#allocation8 + $0x48] sm:$0xff] %v207_v46  ;;  %300 = vst [vmem:[#allocation8 + $0xc8] sm:$0xff] %v255_v47  ;;  %v210_v48 = vpop.f32.mrb[10].mxu0  ;;  %v258_v49 = vpop.f32.mrb[10].mxu1 }
 0x142   :  { %v211_v50 = vadd.f32 %v210_v48, %v560_v7  ;;  %v259_v51 = vadd.f32 %v258_v49, %v560_v7  ;;  %v212_v52 = vpop.f32.mrb[11].mxu0  ;;  %v260_v53 = vpop.f32.mrb[11].mxu1 }
 0x143   :  { %v213_v54 = vadd.f32 %v212_v52, %v562_v8  ;;  %v261_v55 = vadd.f32 %v260_v53, %v562_v8 }
 0x144   :  { %285 = vst [vmem:[#allocation8 + $0x50] sm:$0xff] %v211_v50  ;;  %301 = vst [vmem:[#allocation8 + $0xd0] sm:$0xff] %v259_v51 }
 0x145   :  { %286 = vst [vmem:[#allocation8 + $0x58] sm:$0xff] %v213_v54  ;;  %302 = vst [vmem:[#allocation8 + $0xd8] sm:$0xff] %v261_v55  ;;  %v216_v56 = vpop.f32.mrb[12].mxu0  ;;  %v264_v57 = vpop.f32.mrb[12].mxu1 }
 0x146   :  { %v217_v58 = vadd.f32 %v216_v56, %v560_v7  ;;  %v265_v59 = vadd.f32 %v264_v57, %v560_v7  ;;  %v218_v60 = vpop.f32.mrb[13].mxu0  ;;  %v266_v61 = vpop.f32.mrb[13].mxu1 }
 0x147   :  { %v219_v62 = vadd.f32 %v218_v60, %v562_v8  ;;  %v267_v63 = vadd.f32 %v266_v61, %v562_v8 }
 0x148   :  { %287 = vst [vmem:[#allocation8 + $0x60] sm:$0xff] %v217_v58  ;;  %303 = vst [vmem:[#allocation8 + $0xe0] sm:$0xff] %v265_v59 }
 0x149   :  { %288 = vst [vmem:[#allocation8 + $0x68] sm:$0xff] %v219_v62  ;;  %304 = vst [vmem:[#allocation8 + $0xe8] sm:$0xff] %v267_v63  ;;  %v222_v1 = vpop.f32.mrb[14].mxu0  ;;  %v270_v2 = vpop.f32.mrb[14].mxu1 }
 0x14a   :  { %v223_v3 = vadd.f32 %v222_v1, %v560_v7  ;;  %v271_v4 = vadd.f32 %v270_v2, %v560_v7  ;;  %v224_v5 = vpop.f32.mrb[15].mxu0  ;;  %v272_v6 = vpop.f32.mrb[15].mxu1 }
 0x14b   :  { %v225_v9 = vadd.f32 %v224_v5, %v562_v8  ;;  %v273_v10 = vadd.f32 %v272_v6, %v562_v8 }
 0x14c   :  { %289 = vst [vmem:[#allocation8 + $0x70] sm:$0xff] %v223_v3  ;;  %305 = vst [vmem:[#allocation8 + $0xf0] sm:$0xff] %v271_v4 }
 0x14d   :  { %290 = vst [vmem:[#allocation8 + $0x78] sm:$0xff] %v225_v9  ;;  %306 = vst [vmem:[#allocation8 + $0xf8] sm:$0xff] %v273_v10 }
 0x14e   :  { %459 = shalt.err (!%p456_p0)
}
 0x14f   :  { %s460_s29 = scalar_lea.hbm %s614_s3, 4096 }
 0x150   :  { %p461_p1 = scmp.ne.s32.totalorder %s614_s3, %s460_s29  ;;  %p464_p2 = scmp.lt.u32.totalorder %s460_s29, %s614_s3 }
 0x152   :  { %p466_p3 = pnand %p464_p2, %p461_p1 }
 0x154   :  { %469 = shalt.err (!%p466_p3)
}
 0x155   :  { %318 = dma.vmem_to_hbm [thread:$0]  %s313_s25, 4096, %s614_s3, [#allocation4], %s477_s22, %s477_s22, %s478_s23  }
 0x156   :  { %474 = dma.done.wait [#allocation4], 4096  }
 0x157   :  { %475 = vsyncadd [#allocation4], 4294963200 }
 0x158   :  { %322 = vsyncpa [#allocation3], 1 }
 0x159   :  { %323 = vsyncpa [#allocation6], 1 }
 0x15a   :  { %324 = vsyncpa [#allocation4], 1 }

</bundles_post_ra>
